<compile_context>
chip_gen: v5e
topology: v5e:2x2
jax: 0.10.0
libtpu: 0.0.40
codegen_flags: <defaults>
</compile_context>

<pallas_src>
import jax
import jax.numpy as jnp
from jax.experimental import pallas as pl
from jax.experimental.pallas import tpu as pltpu


def _round_up(n, m):
    return ((n + m - 1) // m) * m


def _cdiv(a, b):
    return (a + b - 1) // b


# --------------------------------------------------------------------------------------
# Kernels
# --------------------------------------------------------------------------------------
def _resblock_kernel_resident(x_ref, w1_ref, b1_ref, w2_ref, b2_ref, o_ref):
    # x_ref keeps the caller's dtype (usually f32) so the residual add stays exact;
    # only the MXU operands are cast to the matmul dtype.
    x = x_ref[...]
    h = jnp.dot(x.astype(w1_ref.dtype), w1_ref[...],
                preferred_element_type=jnp.float32) + b1_ref[...]
    h = jnp.maximum(h, 0.0)
    y = jnp.dot(h.astype(w2_ref.dtype), w2_ref[...],
                preferred_element_type=jnp.float32) + b2_ref[...]
    o_ref[...] = jnp.maximum(y + x.astype(jnp.float32), 0.0).astype(o_ref.dtype)


def _resblock_kernel_htiled(x_ref, w1_ref, b1_ref, w2_ref, b2_ref, o_ref, acc_ref):
    # Reduction-tiled path: grid = (batch_tiles, hidden_tiles); hidden axis is "arbitrary".
    k = pl.program_id(1)

    @pl.when(k == 0)
    def _():
        acc_ref[...] = jnp.zeros_like(acc_ref)

    x = x_ref[...]
    h = jnp.dot(x.astype(w1_ref.dtype), w1_ref[...],
                preferred_element_type=jnp.float32) + b1_ref[...]
    h = jnp.maximum(h, 0.0)                                   # ReLU is per hidden unit -> tileable
    acc_ref[...] += jnp.dot(h.astype(w2_ref.dtype), w2_ref[...],
                            preferred_element_type=jnp.float32)

    @pl.when(k == pl.num_programs(1) - 1)
    def _():
        y = acc_ref[...] + b2_ref[...] + x.astype(jnp.float32)
        o_ref[...] = jnp.maximum(y, 0.0).astype(o_ref.dtype)


# --------------------------------------------------------------------------------------
# Wrapper
# --------------------------------------------------------------------------------------
def residual_block(x, w1, b1, w2, b2, *, tile_b=512, tile_h=512,
                   matmul_dtype=None, out_dtype=None,
                   vmem_budget_bytes=48 * 1024 * 1024,
                   force_hidden_tiling=False):
    """x: (B, in_dim); w1: (in_dim, hidden); b1: (hidden,); w2: (hidden, in_dim); b2: (in_dim,)."""
    B, in_dim = x.shape
    in_dim_w, hidden = w1.shape
    assert in_dim_w == in_dim, "w1 must be (in_dim, hidden)"
    assert w2.shape == (hidden, in_dim), "w2 must be (hidden, in_dim) for the residual add"
    assert b1.shape == (hidden,) and b2.shape == (in_dim,)

    out_dtype = x.dtype if out_dtype is None else jnp.dtype(out_dtype)
    mm_dtype = x.dtype if matmul_dtype is None else jnp.dtype(matmul_dtype)
    # TODO(synk): on v7x, matmul_dtype=jnp.float8_e4m3fn is the native low-precision MXU path
    # (halves weight VMEM/HBM traffic vs bf16); left opt-in here and not exercised in the test.

    F = _round_up(in_dim, 128)            # lane-dense feature dim
    H = _round_up(hidden, 128)            # lane-dense hidden dim

    x_bytes = jnp.dtype(x.dtype).itemsize
    w_bytes = jnp.dtype(mm_dtype).itemsize
    o_bytes = jnp.dtype(out_dtype).itemsize

    # ---- batch tiling: >=2 grid steps when possible (v7x has 2 TCs), minimal tail waste.
    min_steps = 2 if B >= 16 else 1
    n_b = max(_cdiv(B, tile_b), min_steps)
    tb = _round_up(_cdiv(B, n_b), 8)

    # ---- VMEM budgeting / path selection.
    def resident_bytes(tb_):
        wgt = (F * H + H * F) * w_bytes + (H + F) * 4          # single-buffered weights + biases
        act = 2 * tb_ * F * (x_bytes + o_bytes)                 # double-buffered x / out tiles
        tmp = tb_ * (H + F) * 4                                 # f32 h and y intermediates
        return wgt + act + tmp

    weights_fit = (F * H + H * F) * w_bytes <= int(0.6 * vmem_budget_bytes)
    use_htiled = force_hidden_tiling or not weights_fit
    if not use_htiled:
        while resident_bytes(tb) > vmem_budget_bytes and tb > 8:
            tb = _round_up(_cdiv(tb, 2), 8)                     # shrink tile before raising limit
        if resident_bytes(tb) > vmem_budget_bytes:
            use_htiled = True

    if use_htiled:
        th = min(_round_up(min(tile_h, H), 128), H)

        def htiled_bytes(tb_, th_):
            wgt = 2 * (F * th_ + th_ * F) * w_bytes + 2 * th_ * 4 + F * 4   # w1/w2/b1 dbl-buffered
            act = 2 * tb_ * F * (x_bytes + o_bytes)
            tmp = tb_ * th_ * 4 + tb_ * F * 4                               # h tile + f32 acc
            return wgt + act + tmp

        while htiled_bytes(tb, th) > vmem_budget_bytes and (th > 128 or tb > 8):
            if th > 128:
                th = _round_up(_cdiv(th, 2), 128)
            else:
                tb = _round_up(_cdiv(tb, 2), 8)
        Hp = _round_up(H, th)
        est = htiled_bytes(tb, th)
    else:
        th = H
        Hp = H
        est = resident_bytes(tb)

    n_b = _cdiv(B, tb)
    Bp = n_b * tb
    vmem_limit = int(min(max(est + est // 4 + (4 << 20), 32 << 20), 100 << 20))

    # ---- pad/cast params (skipped entirely when already aligned & right dtype).
    def pad2d(a, rows, cols, dtype):
        if a.shape == (rows, cols) and a.dtype == jnp.dtype(dtype):
            return a
        return jnp.zeros((rows, cols), dtype).at[:a.shape[0], :a.shape[1]].set(a.astype(dtype))

    # Zero padding is exact: padded hidden units are ReLU(0)=0 and padded output lanes are
    # ReLU(0+0)=0 and get sliced off.
    xp = pad2d(x, Bp, F, x.dtype)                       # x keeps its dtype -> exact f32 residual
    w1p = pad2d(w1, F, Hp, mm_dtype)
    w2p = pad2d(w2, Hp, F, mm_dtype)
    b1p = pad2d(b1.reshape(1, -1), 1, Hp, jnp.float32)
    b2p = pad2d(b2.reshape(1, -1), 1, F, jnp.float32)

    def run(single_buffer_weights):
        def res_spec(shape):
            idx = lambda *_: (0,) * len(shape)
            if single_buffer_weights:
                return pl.BlockSpec(shape, idx, pipeline_mode=pl.Buffered(1))
            return pl.BlockSpec(shape, idx)

        if use_htiled:
            grid = (n_b, Hp // th)
            in_specs = [
                pl.BlockSpec((tb, F), lambda i, k: (i, 0)),     # x tile, resident across k
                pl.BlockSpec((F, th), lambda i, k: (0, k)),     # w1 hidden tile
                pl.BlockSpec((1, th), lambda i, k: (0, k)),     # b1 hidden tile
                pl.BlockSpec((th, F), lambda i, k: (k, 0)),     # w2 hidden tile
                res_spec((1, F)),                               # b2 resident
            ]
            out_specs = pl.BlockSpec((tb, F), lambda i, k: (i, 0))
            kernel = _resblock_kernel_htiled
            scratch = [pltpu.VMEM((tb, F), jnp.float32)]
            dim_sem = ("parallel", "arbitrary")
        else:
            grid = (n_b,)
            in_specs = [
                pl.BlockSpec((tb, F), lambda i: (i, 0)),        # x tile (lane-dense)
                res_spec((F, H)),                               # w1 resident
                res_spec((1, H)),                               # b1 resident (f32)
                res_spec((H, F)),                               # w2 resident
                res_spec((1, F)),                               # b2 resident (f32)
            ]
            out_specs = pl.BlockSpec((tb, F), lambda i: (i, 0))
            kernel = _resblock_kernel_resident
            scratch = []
            dim_sem = ("parallel",)

        return pl.pallas_call(
            kernel,
            out_shape=jax.ShapeDtypeStruct((Bp, F), out_dtype),
            grid_spec=pltpu.PrefetchScalarGridSpec(
                num_scalar_prefetch=0,
                grid=grid,
                in_specs=in_specs,
                out_specs=out_specs,
                scratch_shapes=scratch,
            ),
            compiler_params=pltpu.CompilerParams(
                dimension_semantics=dim_sem,
                vmem_limit_bytes=vmem_limit,
            ),
        )(xp, w1p, b1p, w2p, b2p)

    try:
        out = run(single_buffer_weights=True)
    except Exception:
        # pipeline_mode=pl.Buffered(1) unsupported on this JAX build -> default buffering.
        out = run(single_buffer_weights=False)

    return out[:B, :in_dim]


def residual_block_ref(x, w1, b1, w2, b2):
    h = jnp.maximum(x @ w1 + b1, 0.0)
    y = h @ w2 + b2
    return jnp.maximum(y + x, 0.0)


if __name__ == "__main__":
    key = jax.random.PRNGKey(0)

    # ---- Test A: small block, weights resident, f32 and bf16 MXU paths ----
    B, in_dim, hidden = 16, 32, 64
    kx, kw1, kb1, kw2, kb2, k2 = jax.random.split(key, 6)
    x = jax.random.normal(kx, (B, in_dim), dtype=jnp.float32)
    w1 = jax.random.normal(kw1, (in_dim, hidden), dtype=jnp.float32) * 0.1
    b1 = jax.random.normal(kb1, (hidden,), dtype=jnp.float32) * 0.1
    w2 = jax.random.normal(kw2, (hidden, in_dim), dtype=jnp.float32) * 0.1
    b2 = jax.random.normal(kb2, (in_dim,), dtype=jnp.float32) * 0.1
    ref = residual_block_ref(x, w1, b1, w2, b2)

    out_f32 = jax.block_until_ready(residual_block(x, w1, b1, w2, b2))
    assert out_f32.shape == (B, in_dim)
    assert jnp.allclose(out_f32, ref, atol=1e-3, rtol=1e-2)

    out_bf16 = jax.block_until_ready(
        residual_block(x, w1, b1, w2, b2, matmul_dtype=jnp.bfloat16))
    assert jnp.allclose(out_bf16, ref, atol=1e-1, rtol=1e-1)

    out_bf16_o = jax.block_until_ready(
        residual_block(x, w1, b1, w2, b2, matmul_dtype=jnp.bfloat16,
                       out_dtype=jnp.bfloat16))
    assert out_bf16_o.dtype == jnp.bfloat16
    assert jnp.allclose(out_bf16_o.astype(jnp.float32), ref, atol=1e-1, rtol=1e-1)

    # ---- Test B: force the hidden-tiled (reduction) fallback, with ragged B / in_dim ----
    B2, in2, hid2 = 20, 48, 256
    kx2, kw12, kb12, kw22, kb22 = jax.random.split(k2, 5)
    x2 = jax.random.normal(kx2, (B2, in2), dtype=jnp.float32)
    w12 = jax.random.normal(kw12, (in2, hid2), dtype=jnp.float32) * 0.1
    b12 = jax.random.normal(kb12, (hid2,), dtype=jnp.float32) * 0.1
    w22 = jax.random.normal(kw22, (hid2, in2), dtype=jnp.float32) * 0.1
    b22 = jax.random.normal(kb22, (in2,), dtype=jnp.float32) * 0.1
    ref2 = residual_block_ref(x2, w12, b12, w22, b22)

    out_tiled = jax.block_until_ready(
        residual_block(x2, w12, b12, w22, b22, tile_h=128, force_hidden_tiling=True))
    assert out_tiled.shape == (B2, in2)
    assert jnp.allclose(out_tiled, ref2, atol=1e-3, rtol=1e-2)

    print("KERNEL_OK")
</pallas_src>

<mosaic_0001>
module attributes {stable_mosaic.version = 11 : i64} {
  func.func @_resblock_kernel_resident(%arg0: i32, %arg1: memref<8x128xf32, #tpu.memory_space<vmem>>, %arg2: memref<128x128xf32, #tpu.memory_space<vmem>>, %arg3: memref<1x128xf32, #tpu.memory_space<vmem>>, %arg4: memref<128x128xf32, #tpu.memory_space<vmem>>, %arg5: memref<1x128xf32, #tpu.memory_space<vmem>>, %arg6: memref<8x128xf32, #tpu.memory_space<vmem>>) attributes {dimension_semantics = [#tpu.dimension_semantics<parallel>], iteration_bounds = array<i64: 2>, scalar_prefetch = 0 : i64, scratch_operands = 0 : i64, tpu.core_type = #tpu.core_type<tc>, window_params = [{transform_indices = @transform_0, window_bounds = array<i64: 8, 128>}, {pipeline_mode = #tpu.pipeline_mode<synchronous>, transform_indices = @transform_1, window_bounds = array<i64: 128, 128>}, {pipeline_mode = #tpu.pipeline_mode<synchronous>, transform_indices = @transform_2, window_bounds = array<i64: 1, 128>}, {pipeline_mode = #tpu.pipeline_mode<synchronous>, transform_indices = @transform_3, window_bounds = array<i64: 128, 128>}, {pipeline_mode = #tpu.pipeline_mode<synchronous>, transform_indices = @transform_4, window_bounds = array<i64: 1, 128>}, {transform_indices = @transform_5, window_bounds = array<i64: 8, 128>}]} {
    %c0 = arith.constant 0 : index
    %c0_0 = arith.constant 0 : index
    %0 = vector.load %arg1[%c0, %c0_0] : memref<8x128xf32, #tpu.memory_space<vmem>>, vector<8x128xf32>
    %c0_1 = arith.constant 0 : index
    %c0_2 = arith.constant 0 : index
    %1 = vector.load %arg2[%c0_1, %c0_2] : memref<128x128xf32, #tpu.memory_space<vmem>>, vector<128x128xf32>
    %cst = arith.constant dense<0.000000e+00> : vector<8x128xf32>
    %2 = tpu.matmul %0, %1, %cst {dimension_numbers = #tpu.dot_dimension_numbers<[1], [0], [0], [1], [0, 0, 1, 1], [], []>} : vector<8x128xf32>, vector<128x128xf32>, vector<8x128xf32> -> vector<8x128xf32>
    %c0_3 = arith.constant 0 : index
    %c0_4 = arith.constant 0 : index
    %3 = vector.load %arg3[%c0_3, %c0_4] : memref<1x128xf32, #tpu.memory_space<vmem>>, vector<1x128xf32>
    %4 = vector.broadcast %3 : vector<1x128xf32> to vector<8x128xf32>
    %5 = arith.addf %2, %4 : vector<8x128xf32>
    %cst_5 = arith.constant 0.000000e+00 : f32
    %6 = vector.broadcast %cst_5 : f32 to vector<8x128xf32>
    %7 = arith.maximumf %5, %6 : vector<8x128xf32>
    %c0_6 = arith.constant 0 : index
    %c0_7 = arith.constant 0 : index
    %8 = vector.load %arg4[%c0_6, %c0_7] : memref<128x128xf32, #tpu.memory_space<vmem>>, vector<128x128xf32>
    %cst_8 = arith.constant dense<0.000000e+00> : vector<8x128xf32>
    %9 = tpu.matmul %7, %8, %cst_8 {dimension_numbers = #tpu.dot_dimension_numbers<[1], [0], [0], [1], [0, 0, 1, 1], [], []>} : vector<8x128xf32>, vector<128x128xf32>, vector<8x128xf32> -> vector<8x128xf32>
    %c0_9 = arith.constant 0 : index
    %c0_10 = arith.constant 0 : index
    %10 = vector.load %arg5[%c0_9, %c0_10] : memref<1x128xf32, #tpu.memory_space<vmem>>, vector<1x128xf32>
    %11 = vector.broadcast %10 : vector<1x128xf32> to vector<8x128xf32>
    %12 = arith.addf %9, %11 : vector<8x128xf32>
    %13 = arith.addf %12, %0 : vector<8x128xf32>
    %cst_11 = arith.constant 0.000000e+00 : f32
    %14 = vector.broadcast %cst_11 : f32 to vector<8x128xf32>
    %15 = arith.maximumf %13, %14 : vector<8x128xf32>
    %c0_12 = arith.constant 0 : index
    %c0_13 = arith.constant 0 : index
    %16 = vector.load %arg6[%c0_12, %c0_13] : memref<8x128xf32, #tpu.memory_space<vmem>>, vector<8x128xf32>
    tpu.vector_store %arg6[%c0_12, %c0_13], %15 {strides = array<i32>} : memref<8x128xf32, #tpu.memory_space<vmem>>, vector<8x128xf32>,
    return
  }
  func.func @transform_0(%arg0: i32) -> (i32, i32) {
    %c0_i32 = arith.constant 0 : i32
    %c0_i32_0 = arith.constant 0 : i32
    return %arg0, %c0_i32 : i32, i32
  }
  func.func @transform_1(%arg0: i32) -> (i32, i32) {
    %c0_i32 = arith.constant 0 : i32
    %c0_i32_0 = arith.constant 0 : i32
    %c0_i32_1 = arith.constant 0 : i32
    return %c0_i32, %c0_i32_0 : i32, i32
  }
  func.func @transform_2(%arg0: i32) -> (i32, i32) {
    %c0_i32 = arith.constant 0 : i32
    %c0_i32_0 = arith.constant 0 : i32
    %c0_i32_1 = arith.constant 0 : i32
    return %c0_i32, %c0_i32_0 : i32, i32
  }
  func.func @transform_3(%arg0: i32) -> (i32, i32) {
    %c0_i32 = arith.constant 0 : i32
    %c0_i32_0 = arith.constant 0 : i32
    %c0_i32_1 = arith.constant 0 : i32
    return %c0_i32, %c0_i32_0 : i32, i32
  }
  func.func @transform_4(%arg0: i32) -> (i32, i32) {
    %c0_i32 = arith.constant 0 : i32
    %c0_i32_0 = arith.constant 0 : i32
    %c0_i32_1 = arith.constant 0 : i32
    return %c0_i32, %c0_i32_0 : i32, i32
  }
  func.func @transform_5(%arg0: i32) -> (i32, i32) {
    %c0_i32 = arith.constant 0 : i32
    %c0_i32_0 = arith.constant 0 : i32
    return %arg0, %c0_i32 : i32, i32
  }
}

module attributes {stable_mosaic.version = 11 : i64} {
  func.func @_resblock_kernel_resident(%arg0: i32, %arg1: memref<8x128xf32, #tpu.memory_space<vmem>>, %arg2: memref<128x128xf32, #tpu.memory_space<vmem>>, %arg3: memref<1x128xf32, #tpu.memory_space<vmem>>, %arg4: memref<128x128xf32, #tpu.memory_space<vmem>>, %arg5: memref<1x128xf32, #tpu.memory_space<vmem>>, %arg6: memref<8x128xf32, #tpu.memory_space<vmem>>) attributes {dimension_semantics = [#tpu.dimension_semantics<parallel>], iteration_bounds = array<i64: 2>, scalar_prefetch = 0 : i64, scratch_operands = 0 : i64, tpu.core_type = #tpu.core_type<tc>, window_params = [{transform_indices = @transform_0, window_bounds = array<i64: 8, 128>}, {pipeline_mode = #tpu.pipeline_mode<synchronous>, transform_indices = @transform_1, window_bounds = array<i64: 128, 128>}, {pipeline_mode = #tpu.pipeline_mode<synchronous>, transform_indices = @transform_2, window_bounds = array<i64: 1, 128>}, {pipeline_mode = #tpu.pipeline_mode<synchronous>, transform_indices = @transform_3, window_bounds = array<i64: 128, 128>}, {pipeline_mode = #tpu.pipeline_mode<synchronous>, transform_indices = @transform_4, window_bounds = array<i64: 1, 128>}, {transform_indices = @transform_5, window_bounds = array<i64: 8, 128>}]} {
    %c0 = arith.constant 0 : index
    %c0_0 = arith.constant 0 : index
    %0 = vector.load %arg1[%c0, %c0_0] : memref<8x128xf32, #tpu.memory_space<vmem>>, vector<8x128xf32>
    %c0_1 = arith.constant 0 : index
    %c0_2 = arith.constant 0 : index
    %1 = vector.load %arg2[%c0_1, %c0_2] : memref<128x128xf32, #tpu.memory_space<vmem>>, vector<128x128xf32>
    %cst = arith.constant dense<0.000000e+00> : vector<8x128xf32>
    %2 = tpu.matmul %0, %1, %cst {dimension_numbers = #tpu.dot_dimension_numbers<[1], [0], [0], [1], [0, 0, 1, 1], [], []>} : vector<8x128xf32>, vector<128x128xf32>, vector<8x128xf32> -> vector<8x128xf32>
    %c0_3 = arith.constant 0 : index
    %c0_4 = arith.constant 0 : index
    %3 = vector.load %arg3[%c0_3, %c0_4] : memref<1x128xf32, #tpu.memory_space<vmem>>, vector<1x128xf32>
    %4 = vector.broadcast %3 : vector<1x128xf32> to vector<8x128xf32>
    %5 = arith.addf %2, %4 : vector<8x128xf32>
    %cst_5 = arith.constant 0.000000e+00 : f32
    %6 = vector.broadcast %cst_5 : f32 to vector<8x128xf32>
    %7 = arith.maximumf %5, %6 : vector<8x128xf32>
    %c0_6 = arith.constant 0 : index
    %c0_7 = arith.constant 0 : index
    %8 = vector.load %arg4[%c0_6, %c0_7] : memref<128x128xf32, #tpu.memory_space<vmem>>, vector<128x128xf32>
    %cst_8 = arith.constant dense<0.000000e+00> : vector<8x128xf32>
    %9 = tpu.matmul %7, %8, %cst_8 {dimension_numbers = #tpu.dot_dimension_numbers<[1], [0], [0], [1], [0, 0, 1, 1], [], []>} : vector<8x128xf32>, vector<128x128xf32>, vector<8x128xf32> -> vector<8x128xf32>
    %c0_9 = arith.constant 0 : index
    %c0_10 = arith.constant 0 : index
    %10 = vector.load %arg5[%c0_9, %c0_10] : memref<1x128xf32, #tpu.memory_space<vmem>>, vector<1x128xf32>
    %11 = vector.broadcast %10 : vector<1x128xf32> to vector<8x128xf32>
    %12 = arith.addf %9, %11 : vector<8x128xf32>
    %13 = arith.addf %12, %0 : vector<8x128xf32>
    %cst_11 = arith.constant 0.000000e+00 : f32
    %14 = vector.broadcast %cst_11 : f32 to vector<8x128xf32>
    %15 = arith.maximumf %13, %14 : vector<8x128xf32>
    %c0_12 = arith.constant 0 : index
    %c0_13 = arith.constant 0 : index
    %16 = vector.load %arg6[%c0_12, %c0_13] : memref<8x128xf32, #tpu.memory_space<vmem>>, vector<8x128xf32>
    tpu.vector_store %arg6[%c0_12, %c0_13], %15 {strides = array<i32>} : memref<8x128xf32, #tpu.memory_space<vmem>>, vector<8x128xf32>,
    return
  }
  func.func @transform_0(%arg0: i32) -> (i32, i32) {
    %c0_i32 = arith.constant 0 : i32
    %c0_i32_0 = arith.constant 0 : i32
    return %arg0, %c0_i32 : i32, i32
  }
  func.func @transform_1(%arg0: i32) -> (i32, i32) {
    %c0_i32 = arith.constant 0 : i32
    %c0_i32_0 = arith.constant 0 : i32
    %c0_i32_1 = arith.constant 0 : i32
    return %c0_i32, %c0_i32_0 : i32, i32
  }
  func.func @transform_2(%arg0: i32) -> (i32, i32) {
    %c0_i32 = arith.constant 0 : i32
    %c0_i32_0 = arith.constant 0 : i32
    %c0_i32_1 = arith.constant 0 : i32
    return %c0_i32, %c0_i32_0 : i32, i32
  }
  func.func @transform_3(%arg0: i32) -> (i32, i32) {
    %c0_i32 = arith.constant 0 : i32
    %c0_i32_0 = arith.constant 0 : i32
    %c0_i32_1 = arith.constant 0 : i32
    return %c0_i32, %c0_i32_0 : i32, i32
  }
  func.func @transform_4(%arg0: i32) -> (i32, i32) {
    %c0_i32 = arith.constant 0 : i32
    %c0_i32_0 = arith.constant 0 : i32
    %c0_i32_1 = arith.constant 0 : i32
    return %c0_i32, %c0_i32_0 : i32, i32
  }
  func.func @transform_5(%arg0: i32) -> (i32, i32) {
    %c0_i32 = arith.constant 0 : i32
    %c0_i32_0 = arith.constant 0 : i32
    return %arg0, %c0_i32 : i32, i32
  }
}

</mosaic_0001>

<bundles_post_ra>
// kernel: tpu_custom_call.1
= control target key start
LH: loop header
LB: loop body
LE: loop exit
PB: predicated region body
PF: predicated region fallthrough
CT: control target
= control target key end

     0   :  { %10 = vsyncpa [#allocation3], 0  ;;  %s906_s0 = inlined_call_operand.hbm [shape: f32[16,128], index: 0, kind: input, shape index: {}]   ;;  %s907_s1 = inlined_call_operand.hbm [shape: f32[128,128], index: 1, kind: input, shape index: {}]   ;;  %s908_s2 = inlined_call_operand.vmem [shape: f32[1,128], index: 2, kind: input, shape index: {}]   ;;  %s909_s3 = inlined_call_operand.hbm [shape: f32[128,128], index: 3, kind: input, shape index: {}]   ;;  %s910_s4 = inlined_call_operand.vmem [shape: f32[1,128], index: 4, kind: input, shape index: {}]   ;;  %s911_s5 = inlined_call_operand.hbm [shape: f32[16,128], index: 5, kind: output, shape index: {}]  }
   0x1   :  { %12 = vsyncpa [#allocation3 + $0x1], 0 }
   0x2   :  { %13 = vsyncpa [#allocation6], 0 }
   0x3   :  { %14 = vsyncpa [#allocation4], 0 }
   0x4   :  { %16 = vsyncpa [#allocation4 + $0x1], 0  ;;  %s748_s18 = smov 0   ;;  %s750_s19 = smov 0  }
   0x5   :  { %s752_s20 = smov 0   ;;  %s754_s21 = smov 0  }
   0x6 LB: > { %s174_s24 = sshll.u32 %s907_s1, 4  ;;  %s772_s25 = sadd.s32 4294967295, %s712_s21   ;;  %s712_s21 = sphi %s754_s21, %s922_s21   ;;  %s708_s20 = sphi %s752_s20, %s921_s20   ;;  %s704_s19 = sphi %s750_s19, %s920_s19   ;;  %s700_s18 = sphi %s748_s18, %s919_s18   ;;  %s175_s24 = int_to_ptr.hbm [resolvable:$true] %s174_s24 }
   0x7   : > { %p466_p0 = scmp.ge.s32.totalorder %s712_s21, 1  ;;  %p43_p1 = scmp.eq.s32.totalorder %s772_s25, 0 }
   0x8   : > { %p163_p2 = scmp.lt.s32.totalorder %s712_s21, 3  ;;  %s714_s27 = smov [#allocation5]  }
   0x9   : > { %s176_s28 = sshll.u32 %s714_s27, 4  ;;  %s191_s6 = sshll.u32 %s909_s3, 4  ;;  %s177_s28 = int_to_ptr.vmem [resolvable:$true] %s176_s28  ;;  %s192_s6 = int_to_ptr.hbm [resolvable:$true] %s191_s6 }
   0xa   : > { %p777_p3 = pnand %p466_p0, %p163_p2  ;;  %s715_s7 = smov [#allocation7]  }
   0xb   : > { %s193_s8 = sshll.u32 %s715_s7, 4  ;;  %s716_s9 = smov 128   ;;  %s194_s8 = int_to_ptr.vmem [resolvable:$true] %s193_s8 }
   0xc   : > { %p493_p4 = pneg %p777_p3  ;;  %s717_s10 = smov 8  }
   0xd   : > { %s465_s11 = sadd.s32 4294967294, %s712_s21   ;;  %s791_s12 = sadd.s32 1, %s712_s21  }
   0xe   : > { %p494_p6 = pnand %p493_p4, %p43_p1  ;;  %s26_s13 = ssub.s32 %s712_s21, %s791_s12 }
   0xf   : > { %s29_s14 = sadd.s32 1, %s708_s20  ;;  %p27_p7 = scmp.eq.s32.totalorder %s26_s13, 0 }
  0x10   : > { %496 = dma.hbm_to_vmem [thread:$0]  (!%p494_p6), %s175_s24, 2048, %s177_s28, [#allocation6], %s716_s9, %s716_s9, %s717_s10  }
  0x11   : > { %499 = dma.hbm_to_vmem [thread:$0]  (!%p494_p6), %s192_s6, 2048, %s194_s8, [#allocation6], %s716_s9, %s716_s9, %s717_s10  }
  0x12   : > { %p36_p8 = scmp.ne.s32.totalorder %s708_s20, %s704_s19  ;;  %p37_p9 = scmp.eq.s32.totalorder %s712_s21, 0 }
  0x13   : > { %p42_p10 = scmp.ne.s32.totalorder %s704_s19, %s700_s18  ;;  %p150_p13 = scmp.eq.s32.totalorder %s772_s25, 1 }
  0x14   : > { %s802_s15 = scalar_select %p27_p7, %s708_s20, %s29_s14  }
  0x15   : > { %p804_p11 = por %p37_p9, %p36_p8  ;;  %p810_p12 = por %p43_p1, %p42_p10 }
  0x16   : > { %p156_p0 = scmp.eq.s32.totalorder %s465_s11, 1  ;;  %p510_p2 = scmp.lt.s32.totalorder %s712_s21, 2 }
  0x17   : > { %s210_s22 = sand.u32 1, %s708_s20   ;;  %p817_p4 = por %p150_p13, %p36_p8 }
  0x18   : > { %p821_p6 = por %p156_p0, %p42_p10  ;;  %s470_s27 = sshll.u32 %s210_s22, 3 }
  0x19   : > { %s471_s28 = sshll.u32 %s712_s21, 3  ;;  %s214_s7 = scalar_lea.vmem [#allocation2], %s470_s27 }
  0x1a   : > { %s218_s6 = scalar_lea.hbm %s906_s0, %s471_s28  ;;  %s222_s8 = sshll.u32 %s214_s7, 4  ;;  %s223_s8 = int_to_ptr.vmem [resolvable:$true] %s222_s8 }
  0x1b   : > { %s220_s9 = sshll.u32 %s218_s6, 4  ;;  %p831_p7 = pnand %p510_p2, %p804_p11  ;;  %s221_s9 = int_to_ptr.hbm [resolvable:$true] %s220_s9 }
  0x1c   : > { %s211_s11 = scalar_lea.sflag [#allocation3], %s210_s22  ;;  %s612_s13 = sshra.s32 %s221_s9, 4  ;;  %s613_s13 = int_to_ptr.hbm [resolvable:$true] %s612_s13 }
  0x1d   : > { %s614_s14 = scalar_lea.hbm %s613_s13, 8  ;;  %p616_p9 = pneg %p831_p7 }
  0x1e   : > { %p615_p8 = scmp.ne.s32.totalorder %s613_s13, %s614_s14  ;;  %s619_s29 = scalar_lea.hbm %s906_s0, 16 }
  0x1f   : > { %p620_p11 = scmp.lt.s32.totalorder %s613_s13, %s906_s0  ;;  %p621_p0 = scmp.lt.s32.totalorder %s619_s29, %s614_s14 }
  0x20   : > { %p617_p10 = pnand %p616_p9, %p615_p8 }
  0x21   : > { %p622_p2 = por %p621_p0, %p620_p11 }
  0x22   : > { %p618_p13 = pneg %p617_p10 }
  0x24   : > { %p623_p5 = pnand %p622_p2, %p618_p13 }
  0x26   : > { %626 = shalt.err (!%p623_p5)
}
  0x27   : > { %503 = dma.hbm_to_vmem [thread:$0]  (!%p831_p7), %s221_s9, 128, %s223_s8, %s211_s11  }
  0x28   : > { %231 = sbr.rel (%p777_p3) target bundleno = 345 (0x159), region = 40  ;;  %s848_s22 = sand.u32 (!%p777_p3), 1, %s704_s19  }
  0x29   : > { %s473_s6 = sshll.u32 (!%p777_p3), %s848_s22, 3  ;;  %s234_s7 = scalar_lea.sflag (!%p777_p3), [#allocation3], %s848_s22 }
  0x2a   : > { %s854_s13 = scalar_lea.vmem (!%p777_p3), [#allocation2], %s473_s6 }
  0x2d   : > { %687 = dma.done.wait (%p810_p12), %s234_s7, 128  }
  0x2e   : > { %689 = vsyncadd (%p810_p12), %s234_s7, 4294967168 }
  0x2f   : > { %691 = dma.done.wait (%p43_p1), [#allocation6], 4096  }
  0x30   : > { %693 = vsyncadd (%p43_p1), [#allocation6], 4294963200  ;;  %v291_v0 = vld [vmem:[#allocation5 + $0x78] sm:$0xff]  ;;  %v290_v1 = vld [vmem:[#allocation5 + $0x70] sm:$0xff]  ;;  %s478_s8 = sshll.u32 %s772_s25, 3  ;;  %s274_s28 = scalar_lea.vmem [#allocation8], %s473_s6 }
  0x31   : > { %296 = vmatpush.msra.mxu0 %v291_v0  ;;  %v289_v2 = vld [vmem:[#allocation5 + $0x68] sm:$0xff]  ;;  %v288_v3 = vld [vmem:[#allocation5 + $0x60] sm:$0xff]  ;;  %v332_v4 = vld [vmem:[#allocation7 + $0x78] sm:$0xff]  ;;  %s371_s27 = scalar_lea.hbm %s911_s5, %s478_s8  ;;  %s373_s29 = sshll.u32 %s274_s28, 4  ;;  %s374_s29 = int_to_ptr.vmem [resolvable:$true] %s373_s29 }
  0x32   : > { %v287_v5 = vld [vmem:[#allocation5 + $0x58] sm:$0xff]  ;;  %337 = vmatpush.msra.mxu1 %v332_v4  ;;  %v331_v6 = vld [vmem:[#allocation7 + $0x70] sm:$0xff]  ;;  %v330_v7 = vld [vmem:[#allocation7 + $0x68] sm:$0xff]  ;;  %s375_s30 = sshll.u32 %s371_s27, 4  ;;  %s361_s25 = scalar_lea.sflag [#allocation4], %s848_s22  ;;  %s376_s30 = int_to_ptr.hbm [resolvable:$true] %s375_s30 }
  0x33   : > { %297 = vmatpush.msra.mxu0 %v290_v1  ;;  %v286_v8 = vld [vmem:[#allocation5 + $0x50] sm:$0xff]  ;;  %v329_v9 = vld [vmem:[#allocation7 + $0x60] sm:$0xff]  ;;  %v285_v10 = vld [vmem:[#allocation5 + $0x48] sm:$0xff]  ;;  %s656_s16 = sshra.s32 %s376_s30, 4  ;;  %s662_s17 = scalar_lea.hbm %s911_s5, 16  ;;  %s657_s16 = int_to_ptr.hbm [resolvable:$true] %s656_s16 }
  0x34   : > { %338 = vmatpush.msra.mxu1 %v331_v6  ;;  %v328_v11 = vld [vmem:[#allocation7 + $0x58] sm:$0xff]  ;;  %v284_v12 = vld [vmem:[#allocation5 + $0x40] sm:$0xff]  ;;  %v327_v13 = vld [vmem:[#allocation7 + $0x50] sm:$0xff]  ;;  %s658_s7 = scalar_lea.hbm %s657_s16, 8  ;;  %p663_p12 = scmp.lt.s32.totalorder %s657_s16, %s911_s5 }
  0x35   : > { %298 = vmatpush.msra.mxu0 %v289_v2  ;;  %v283_v14 = vld [vmem:[#allocation5 + $0x38] sm:$0xff]  ;;  %v326_v15 = vld [vmem:[#allocation7 + $0x48] sm:$0xff]  ;;  %v282_v16 = vld [vmem:[#allocation5 + $0x30] sm:$0xff]  ;;  %p659_p1 = scmp.ne.s32.totalorder %s657_s16, %s658_s7  ;;  %p664_p7 = scmp.lt.s32.totalorder %s662_s17, %s658_s7 }
  0x36   : > { %339 = vmatpush.msra.mxu1 %v330_v7  ;;  %v325_v17 = vld [vmem:[#allocation7 + $0x40] sm:$0xff]  ;;  %v281_v18 = vld [vmem:[#allocation5 + $0x28] sm:$0xff]  ;;  %v324_v19 = vld [vmem:[#allocation7 + $0x38] sm:$0xff] }
  0x37   : > { %299 = vmatpush.msra.mxu0 %v288_v3  ;;  %v280_v20 = vld [vmem:[#allocation5 + $0x20] sm:$0xff]  ;;  %v323_v21 = vld [vmem:[#allocation7 + $0x30] sm:$0xff]  ;;  %v279_v22 = vld [vmem:[#allocation5 + $0x18] sm:$0xff]  ;;  %p660_p3 = pnand %p659_p1, %p817_p4  ;;  %p665_p8 = por %p664_p7, %p663_p12 }
  0x38   : > { %340 = vmatpush.msra.mxu1 %v329_v9  ;;  %v322_v23 = vld [vmem:[#allocation7 + $0x28] sm:$0xff]  ;;  %v278_v24 = vld [vmem:[#allocation5 + $0x10] sm:$0xff]  ;;  %v321_v25 = vld [vmem:[#allocation7 + $0x20] sm:$0xff] }
  0x39   : > { %300 = vmatpush.msra.mxu0 %v287_v5  ;;  %v277_v26 = vld [vmem:[#allocation5 + $0x8] sm:$0xff]  ;;  %v320_v27 = vld [vmem:[#allocation7 + $0x18] sm:$0xff]  ;;  %v276_v28 = vld [vmem:[#allocation5] sm:$0xff]  ;;  %p661_p5 = pneg %p660_p3 }
  0x3a   : > { %341 = vmatpush.msra.mxu1 %v328_v11  ;;  %v275_v29 = vld [vmem:[%s854_s13] sm:$0xff]  ;;  %v318_v31 = vld [vmem:[#allocation7 + $0x8] sm:$0xff]  ;;  %v317_v32 = vld [vmem:[#allocation7] sm:$0xff] }
  0x3b   : > { %301 = vmatpush.msra.mxu0 %v286_v8  ;;  %v319_v30 = vld [vmem:[#allocation7 + $0x10] sm:$0xff]  ;;  %p666_p9 = pnand %p665_p8, %p661_p5 }
  0x3c   : > { %342 = vmatpush.msra.mxu1 %v327_v13  ;;  %v550_v33 = vld [vmem:[%s908_s2] ss:$0 sm:$0xff] }
  0x3d   : > { %302 = vmatpush.msra.mxu0 %v285_v10  ;;  %v551_v37 = vld [vmem:[%s910_s4] ss:$0 sm:$0xff] }
  0x3e   : > { %343 = vmatpush.msra.mxu1 %v326_v15 }
  0x3f   : > { %303 = vmatpush.msra.mxu0 %v284_v12 }
  0x40   : > { %344 = vmatpush.msra.mxu1 %v325_v17 }
  0x41   : > { %304 = vmatpush.msra.mxu0 %v283_v14 }
  0x42   : > { %345 = vmatpush.msra.mxu1 %v324_v19 }
  0x43   : > { %305 = vmatpush.msra.mxu0 %v282_v16 }
  0x44   : > { %346 = vmatpush.msra.mxu1 %v323_v21 }
  0x45   : > { %306 = vmatpush.msra.mxu0 %v281_v18 }
  0x46   : > { %347 = vmatpush.msra.mxu1 %v322_v23 }
  0x47   : > { %307 = vmatpush.msra.mxu0 %v280_v20 }
  0x48   : > { %348 = vmatpush.msra.mxu1 %v321_v25 }
  0x49   : > { %308 = vmatpush.msra.mxu0 %v279_v22 }
  0x4a   : > { %349 = vmatpush.msra.mxu1 %v320_v27 }
  0x4b   : > { %309 = vmatpush.msra.mxu0 %v278_v24 }
  0x4c   : > { %350 = vmatpush.msra.mxu1 %v319_v30 }
  0x4d   : > { %310 = vmatpush.msra.mxu0 %v277_v26 }
  0x4e   : > { %351 = vmatpush.msra.mxu1 %v318_v31 }
  0x4f   : > { %311 = vmatpush.msra.mxu0 %v276_v28 }
  0x50   : > { %312 = vmatmul.f32.vlgmr.msra.gmra.mxu0 %v275_v29  ;;  %352 = vmatpush.msra.mxu1 %v317_v32 }
  0xcd   : > { %v313_v34 = vpop.f32.mrf.mxu0 }
  0xce   : > { %v314_v35 = vadd.f32 %v550_v33, %v313_v34 }
  0xd0   : > { %v316_v36 = vmax.f32 %v314_v35, 0.0 }
  0xd2   : > { %353 = vmatmul.f32.vlgmr.msra.gmra.mxu1 %v316_v36 }
 0x14f   : > { %v354_v38 = vpop.f32.mrf.mxu1 }
 0x150   : > { %v355_v39 = vadd.f32 %v551_v37, %v354_v38 }
 0x152   : > { %v357_v40 = vadd.f32 %v355_v39, %v275_v29 }
 0x154   : > { %v358_v41 = vmax.f32 %v357_v40, 0.0 }
 0x156   : > { %359 = vst [vmem:[%s274_s28] sm:$0xff] %v358_v41 }
 0x157   : > { %669 = shalt.err (!%p666_p9)
}
 0x158   : > { %491 = dma.vmem_to_hbm [thread:$0]  (%p817_p4), %s374_s29, 128, %s376_s30, %s361_s25  }
 0x159 PF: > { %s387_s22 = sand.u32 1, %s700_s18   ;;  %p918_p10 = scmp.ge.s32.totalorder %s712_s21, 2 }
 0x15a   : > { %s388_s9 = scalar_lea.sflag [#allocation4], %s387_s22 }
 0x15b   : > { %p505_p13 = pnand %p918_p10, %p821_p6 }
 0x15d   : > { %p506_p11 = pneg %p505_p13 }
 0x15f   : > { %695 = dma.done.wait (%p506_p11), %s388_s9, 128  }
 0x160   : > { %697 = vsyncadd (%p506_p11), %s388_s9, 4294967168  ;;  %p19_p0 = scmp.ge.s32.totalorder %s791_s12, 4   ;;  %s919_s18 = smov %s704_s19 }
 0x161   : > { %s920_s19 = smov %s708_s20  ;;  %s921_s20 = smov %s802_s15 }
 0x162   : > { %s922_s21 = smov %s791_s12  ;;  %21 = sbr.rel (!%p19_p0) target bundleno = 6 (0x6), region = 93 }
 0x167   :  { %394 = vsyncpa [#allocation3], 1 }
 0x168   :  { %396 = vsyncpa [#allocation3 + $0x1], 1 }
 0x169   :  { %397 = vsyncpa [#allocation6], 1 }
 0x16a   :  { %398 = vsyncpa [#allocation4], 1 }
 0x16b   :  { %400 = vsyncpa [#allocation4 + $0x1], 1 }

// kernel: tpu_custom_call.1
= control target key start
LH: loop header
LB: loop body
LE: loop exit
PB: predicated region body
PF: predicated region fallthrough
CT: control target
= control target key end

     0   :  { %10 = vsyncpa [#allocation3], 0  ;;  %s906_s0 = inlined_call_operand.hbm [shape: f32[16,128], index: 0, kind: input, shape index: {}]   ;;  %s907_s1 = inlined_call_operand.hbm [shape: f32[128,128], index: 1, kind: input, shape index: {}]   ;;  %s908_s2 = inlined_call_operand.vmem [shape: f32[1,128], index: 2, kind: input, shape index: {}]   ;;  %s909_s3 = inlined_call_operand.hbm [shape: f32[128,128], index: 3, kind: input, shape index: {}]   ;;  %s910_s4 = inlined_call_operand.vmem [shape: f32[1,128], index: 4, kind: input, shape index: {}]   ;;  %s911_s5 = inlined_call_operand.hbm [shape: f32[16,128], index: 5, kind: output, shape index: {}]  }
   0x1   :  { %12 = vsyncpa [#allocation3 + $0x1], 0 }
   0x2   :  { %13 = vsyncpa [#allocation6], 0 }
   0x3   :  { %14 = vsyncpa [#allocation4], 0 }
   0x4   :  { %16 = vsyncpa [#allocation4 + $0x1], 0  ;;  %s748_s18 = smov 0   ;;  %s750_s19 = smov 0  }
   0x5   :  { %s752_s20 = smov 0   ;;  %s754_s21 = smov 0  }
   0x6 LB: > { %s174_s24 = sshll.u32 %s907_s1, 4  ;;  %s772_s25 = sadd.s32 4294967295, %s712_s21   ;;  %s712_s21 = sphi %s754_s21, %s922_s21   ;;  %s708_s20 = sphi %s752_s20, %s921_s20   ;;  %s704_s19 = sphi %s750_s19, %s920_s19   ;;  %s700_s18 = sphi %s748_s18, %s919_s18   ;;  %s175_s24 = int_to_ptr.hbm [resolvable:$true] %s174_s24 }
   0x7   : > { %p466_p0 = scmp.ge.s32.totalorder %s712_s21, 1  ;;  %p43_p1 = scmp.eq.s32.totalorder %s772_s25, 0 }
   0x8   : > { %p163_p2 = scmp.lt.s32.totalorder %s712_s21, 3  ;;  %s714_s27 = smov [#allocation5]  }
   0x9   : > { %s176_s28 = sshll.u32 %s714_s27, 4  ;;  %s191_s6 = sshll.u32 %s909_s3, 4  ;;  %s177_s28 = int_to_ptr.vmem [resolvable:$true] %s176_s28  ;;  %s192_s6 = int_to_ptr.hbm [resolvable:$true] %s191_s6 }
   0xa   : > { %p777_p3 = pnand %p466_p0, %p163_p2  ;;  %s715_s7 = smov [#allocation7]  }
   0xb   : > { %s193_s8 = sshll.u32 %s715_s7, 4  ;;  %s716_s9 = smov 128   ;;  %s194_s8 = int_to_ptr.vmem [resolvable:$true] %s193_s8 }
   0xc   : > { %p493_p4 = pneg %p777_p3  ;;  %s717_s10 = smov 8  }
   0xd   : > { %s465_s11 = sadd.s32 4294967294, %s712_s21   ;;  %s791_s12 = sadd.s32 1, %s712_s21  }
   0xe   : > { %p494_p6 = pnand %p493_p4, %p43_p1  ;;  %s26_s13 = ssub.s32 %s712_s21, %s791_s12 }
   0xf   : > { %s29_s14 = sadd.s32 1, %s708_s20  ;;  %p27_p7 = scmp.eq.s32.totalorder %s26_s13, 0 }
  0x10   : > { %496 = dma.hbm_to_vmem [thread:$0]  (!%p494_p6), %s175_s24, 2048, %s177_s28, [#allocation6], %s716_s9, %s716_s9, %s717_s10  }
  0x11   : > { %499 = dma.hbm_to_vmem [thread:$0]  (!%p494_p6), %s192_s6, 2048, %s194_s8, [#allocation6], %s716_s9, %s716_s9, %s717_s10  }
  0x12   : > { %p36_p8 = scmp.ne.s32.totalorder %s708_s20, %s704_s19  ;;  %p37_p9 = scmp.eq.s32.totalorder %s712_s21, 0 }
  0x13   : > { %p42_p10 = scmp.ne.s32.totalorder %s704_s19, %s700_s18  ;;  %p150_p13 = scmp.eq.s32.totalorder %s772_s25, 1 }
  0x14   : > { %s802_s15 = scalar_select %p27_p7, %s708_s20, %s29_s14  }
  0x15   : > { %p804_p11 = por %p37_p9, %p36_p8  ;;  %p810_p12 = por %p43_p1, %p42_p10 }
  0x16   : > { %p156_p0 = scmp.eq.s32.totalorder %s465_s11, 1  ;;  %p510_p2 = scmp.lt.s32.totalorder %s712_s21, 2 }
  0x17   : > { %s210_s22 = sand.u32 1, %s708_s20   ;;  %p817_p4 = por %p150_p13, %p36_p8 }
  0x18   : > { %p821_p6 = por %p156_p0, %p42_p10  ;;  %s470_s27 = sshll.u32 %s210_s22, 3 }
  0x19   : > { %s471_s28 = sshll.u32 %s712_s21, 3  ;;  %s214_s7 = scalar_lea.vmem [#allocation2], %s470_s27 }
  0x1a   : > { %s218_s6 = scalar_lea.hbm %s906_s0, %s471_s28  ;;  %s222_s8 = sshll.u32 %s214_s7, 4  ;;  %s223_s8 = int_to_ptr.vmem [resolvable:$true] %s222_s8 }
  0x1b   : > { %s220_s9 = sshll.u32 %s218_s6, 4  ;;  %p831_p7 = pnand %p510_p2, %p804_p11  ;;  %s221_s9 = int_to_ptr.hbm [resolvable:$true] %s220_s9 }
  0x1c   : > { %s211_s11 = scalar_lea.sflag [#allocation3], %s210_s22  ;;  %s612_s13 = sshra.s32 %s221_s9, 4  ;;  %s613_s13 = int_to_ptr.hbm [resolvable:$true] %s612_s13 }
  0x1d   : > { %s614_s14 = scalar_lea.hbm %s613_s13, 8  ;;  %p616_p9 = pneg %p831_p7 }
  0x1e   : > { %p615_p8 = scmp.ne.s32.totalorder %s613_s13, %s614_s14  ;;  %s619_s29 = scalar_lea.hbm %s906_s0, 16 }
  0x1f   : > { %p620_p11 = scmp.lt.s32.totalorder %s613_s13, %s906_s0  ;;  %p621_p0 = scmp.lt.s32.totalorder %s619_s29, %s614_s14 }
  0x20   : > { %p617_p10 = pnand %p616_p9, %p615_p8 }
  0x21   : > { %p622_p2 = por %p621_p0, %p620_p11 }
  0x22   : > { %p618_p13 = pneg %p617_p10 }
  0x24   : > { %p623_p5 = pnand %p622_p2, %p618_p13 }
  0x26   : > { %626 = shalt.err (!%p623_p5)
}
  0x27   : > { %503 = dma.hbm_to_vmem [thread:$0]  (!%p831_p7), %s221_s9, 128, %s223_s8, %s211_s11  }
  0x28   : > { %231 = sbr.rel (%p777_p3) target bundleno = 345 (0x159), region = 40  ;;  %s848_s22 = sand.u32 (!%p777_p3), 1, %s704_s19  }
  0x29   : > { %s473_s6 = sshll.u32 (!%p777_p3), %s848_s22, 3  ;;  %s234_s7 = scalar_lea.sflag (!%p777_p3), [#allocation3], %s848_s22 }
  0x2a   : > { %s854_s13 = scalar_lea.vmem (!%p777_p3), [#allocation2], %s473_s6 }
  0x2d   : > { %687 = dma.done.wait (%p810_p12), %s234_s7, 128  }
  0x2e   : > { %689 = vsyncadd (%p810_p12), %s234_s7, 4294967168 }
  0x2f   : > { %691 = dma.done.wait (%p43_p1), [#allocation6], 4096  }
  0x30   : > { %693 = vsyncadd (%p43_p1), [#allocation6], 4294963200  ;;  %v291_v0 = vld [vmem:[#allocation5 + $0x78] sm:$0xff]  ;;  %v290_v1 = vld [vmem:[#allocation5 + $0x70] sm:$0xff]  ;;  %s478_s8 = sshll.u32 %s772_s25, 3  ;;  %s274_s28 = scalar_lea.vmem [#allocation8], %s473_s6 }
  0x31   : > { %296 = vmatpush.msra.mxu0 %v291_v0  ;;  %v289_v2 = vld [vmem:[#allocation5 + $0x68] sm:$0xff]  ;;  %v288_v3 = vld [vmem:[#allocation5 + $0x60] sm:$0xff]  ;;  %v332_v4 = vld [vmem:[#allocation7 + $0x78] sm:$0xff]  ;;  %s371_s27 = scalar_lea.hbm %s911_s5, %s478_s8  ;;  %s373_s29 = sshll.u32 %s274_s28, 4  ;;  %s374_s29 = int_to_ptr.vmem [resolvable:$true] %s373_s29 }
  0x32   : > { %v287_v5 = vld [vmem:[#allocation5 + $0x58] sm:$0xff]  ;;  %337 = vmatpush.msra.mxu1 %v332_v4  ;;  %v331_v6 = vld [vmem:[#allocation7 + $0x70] sm:$0xff]  ;;  %v330_v7 = vld [vmem:[#allocation7 + $0x68] sm:$0xff]  ;;  %s375_s30 = sshll.u32 %s371_s27, 4  ;;  %s361_s25 = scalar_lea.sflag [#allocation4], %s848_s22  ;;  %s376_s30 = int_to_ptr.hbm [resolvable:$true] %s375_s30 }
  0x33   : > { %297 = vmatpush.msra.mxu0 %v290_v1  ;;  %v286_v8 = vld [vmem:[#allocation5 + $0x50] sm:$0xff]  ;;  %v329_v9 = vld [vmem:[#allocation7 + $0x60] sm:$0xff]  ;;  %v285_v10 = vld [vmem:[#allocation5 + $0x48] sm:$0xff]  ;;  %s656_s16 = sshra.s32 %s376_s30, 4  ;;  %s662_s17 = scalar_lea.hbm %s911_s5, 16  ;;  %s657_s16 = int_to_ptr.hbm [resolvable:$true] %s656_s16 }
  0x34   : > { %338 = vmatpush.msra.mxu1 %v331_v6  ;;  %v328_v11 = vld [vmem:[#allocation7 + $0x58] sm:$0xff]  ;;  %v284_v12 = vld [vmem:[#allocation5 + $0x40] sm:$0xff]  ;;  %v327_v13 = vld [vmem:[#allocation7 + $0x50] sm:$0xff]  ;;  %s658_s7 = scalar_lea.hbm %s657_s16, 8  ;;  %p663_p12 = scmp.lt.s32.totalorder %s657_s16, %s911_s5 }
  0x35   : > { %298 = vmatpush.msra.mxu0 %v289_v2  ;;  %v283_v14 = vld [vmem:[#allocation5 + $0x38] sm:$0xff]  ;;  %v326_v15 = vld [vmem:[#allocation7 + $0x48] sm:$0xff]  ;;  %v282_v16 = vld [vmem:[#allocation5 + $0x30] sm:$0xff]  ;;  %p659_p1 = scmp.ne.s32.totalorder %s657_s16, %s658_s7  ;;  %p664_p7 = scmp.lt.s32.totalorder %s662_s17, %s658_s7 }
  0x36   : > { %339 = vmatpush.msra.mxu1 %v330_v7  ;;  %v325_v17 = vld [vmem:[#allocation7 + $0x40] sm:$0xff]  ;;  %v281_v18 = vld [vmem:[#allocation5 + $0x28] sm:$0xff]  ;;  %v324_v19 = vld [vmem:[#allocation7 + $0x38] sm:$0xff] }
  0x37   : > { %299 = vmatpush.msra.mxu0 %v288_v3  ;;  %v280_v20 = vld [vmem:[#allocation5 + $0x20] sm:$0xff]  ;;  %v323_v21 = vld [vmem:[#allocation7 + $0x30] sm:$0xff]  ;;  %v279_v22 = vld [vmem:[#allocation5 + $0x18] sm:$0xff]  ;;  %p660_p3 = pnand %p659_p1, %p817_p4  ;;  %p665_p8 = por %p664_p7, %p663_p12 }
  0x38   : > { %340 = vmatpush.msra.mxu1 %v329_v9  ;;  %v322_v23 = vld [vmem:[#allocation7 + $0x28] sm:$0xff]  ;;  %v278_v24 = vld [vmem:[#allocation5 + $0x10] sm:$0xff]  ;;  %v321_v25 = vld [vmem:[#allocation7 + $0x20] sm:$0xff] }
  0x39   : > { %300 = vmatpush.msra.mxu0 %v287_v5  ;;  %v277_v26 = vld [vmem:[#allocation5 + $0x8] sm:$0xff]  ;;  %v320_v27 = vld [vmem:[#allocation7 + $0x18] sm:$0xff]  ;;  %v276_v28 = vld [vmem:[#allocation5] sm:$0xff]  ;;  %p661_p5 = pneg %p660_p3 }
  0x3a   : > { %341 = vmatpush.msra.mxu1 %v328_v11  ;;  %v275_v29 = vld [vmem:[%s854_s13] sm:$0xff]  ;;  %v318_v31 = vld [vmem:[#allocation7 + $0x8] sm:$0xff]  ;;  %v317_v32 = vld [vmem:[#allocation7] sm:$0xff] }
  0x3b   : > { %301 = vmatpush.msra.mxu0 %v286_v8  ;;  %v319_v30 = vld [vmem:[#allocation7 + $0x10] sm:$0xff]  ;;  %p666_p9 = pnand %p665_p8, %p661_p5 }
  0x3c   : > { %342 = vmatpush.msra.mxu1 %v327_v13  ;;  %v550_v33 = vld [vmem:[%s908_s2] ss:$0 sm:$0xff] }
  0x3d   : > { %302 = vmatpush.msra.mxu0 %v285_v10  ;;  %v551_v37 = vld [vmem:[%s910_s4] ss:$0 sm:$0xff] }
  0x3e   : > { %343 = vmatpush.msra.mxu1 %v326_v15 }
  0x3f   : > { %303 = vmatpush.msra.mxu0 %v284_v12 }
  0x40   : > { %344 = vmatpush.msra.mxu1 %v325_v17 }
  0x41   : > { %304 = vmatpush.msra.mxu0 %v283_v14 }
  0x42   : > { %345 = vmatpush.msra.mxu1 %v324_v19 }
  0x43   : > { %305 = vmatpush.msra.mxu0 %v282_v16 }
  0x44   : > { %346 = vmatpush.msra.mxu1 %v323_v21 }
  0x45   : > { %306 = vmatpush.msra.mxu0 %v281_v18 }
  0x46   : > { %347 = vmatpush.msra.mxu1 %v322_v23 }
  0x47   : > { %307 = vmatpush.msra.mxu0 %v280_v20 }
  0x48   : > { %348 = vmatpush.msra.mxu1 %v321_v25 }
  0x49   : > { %308 = vmatpush.msra.mxu0 %v279_v22 }
  0x4a   : > { %349 = vmatpush.msra.mxu1 %v320_v27 }
  0x4b   : > { %309 = vmatpush.msra.mxu0 %v278_v24 }
  0x4c   : > { %350 = vmatpush.msra.mxu1 %v319_v30 }
  0x4d   : > { %310 = vmatpush.msra.mxu0 %v277_v26 }
  0x4e   : > { %351 = vmatpush.msra.mxu1 %v318_v31 }
  0x4f   : > { %311 = vmatpush.msra.mxu0 %v276_v28 }
  0x50   : > { %312 = vmatmul.f32.vlgmr.msra.gmra.mxu0 %v275_v29  ;;  %352 = vmatpush.msra.mxu1 %v317_v32 }
  0xcd   : > { %v313_v34 = vpop.f32.mrf.mxu0 }
  0xce   : > { %v314_v35 = vadd.f32 %v550_v33, %v313_v34 }
  0xd0   : > { %v316_v36 = vmax.f32 %v314_v35, 0.0 }
  0xd2   : > { %353 = vmatmul.f32.vlgmr.msra.gmra.mxu1 %v316_v36 }
 0x14f   : > { %v354_v38 = vpop.f32.mrf.mxu1 }
 0x150   : > { %v355_v39 = vadd.f32 %v551_v37, %v354_v38 }
 0x152   : > { %v357_v40 = vadd.f32 %v355_v39, %v275_v29 }
 0x154   : > { %v358_v41 = vmax.f32 %v357_v40, 0.0 }
 0x156   : > { %359 = vst [vmem:[%s274_s28] sm:$0xff] %v358_v41 }
 0x157   : > { %669 = shalt.err (!%p666_p9)
}
 0x158   : > { %491 = dma.vmem_to_hbm [thread:$0]  (%p817_p4), %s374_s29, 128, %s376_s30, %s361_s25  }
 0x159 PF: > { %s387_s22 = sand.u32 1, %s700_s18   ;;  %p918_p10 = scmp.ge.s32.totalorder %s712_s21, 2 }
 0x15a   : > { %s388_s9 = scalar_lea.sflag [#allocation4], %s387_s22 }
 0x15b   : > { %p505_p13 = pnand %p918_p10, %p821_p6 }
 0x15d   : > { %p506_p11 = pneg %p505_p13 }
 0x15f   : > { %695 = dma.done.wait (%p506_p11), %s388_s9, 128  }
 0x160   : > { %697 = vsyncadd (%p506_p11), %s388_s9, 4294967168  ;;  %p19_p0 = scmp.ge.s32.totalorder %s791_s12, 4   ;;  %s919_s18 = smov %s704_s19 }
 0x161   : > { %s920_s19 = smov %s708_s20  ;;  %s921_s20 = smov %s802_s15 }
 0x162   : > { %s922_s21 = smov %s791_s12  ;;  %21 = sbr.rel (!%p19_p0) target bundleno = 6 (0x6), region = 93 }
 0x167   :  { %394 = vsyncpa [#allocation3], 1 }
 0x168   :  { %396 = vsyncpa [#allocation3 + $0x1], 1 }
 0x169   :  { %397 = vsyncpa [#allocation6], 1 }
 0x16a   :  { %398 = vsyncpa [#allocation4], 1 }
 0x16b   :  { %400 = vsyncpa [#allocation4 + $0x1], 1 }

</bundles_post_ra>
